<compile_context>
chip_gen: v7x
topology: tpu7x:2x2x1
jax: 0.10.0
libtpu: 0.0.40
codegen_flags: <defaults>
</compile_context>

<pallas_src>
import functools

import jax
import jax.numpy as jnp
from jax.experimental import pallas as pl
from jax.experimental.pallas import tpu as pltpu


_VMEM_LIMIT_BYTES = 48 * 1024 * 1024  # v7x-safe scoped-VMEM budget


def _vmem_bytes_estimate(T, D, H, tq, emit_weights):
    bf16, f32 = 2, 4
    est = 0
    est += 2 * T * D * bf16           # x block (double-buffered)
    est += 2 * D * 3 * D * bf16       # packed Wqkv (resident, but budget 2x)
    est += 2 * 3 * D * f32            # packed bqkv
    est += 2 * D * D * bf16           # Wo^T
    est += 2 * D * f32                # bo
    est += 2 * tq * D * f32           # attn_output block
    if emit_weights:
        est += 2 * H * tq * T * f32   # attention-weights block
    est += T * 3 * D * bf16           # qkv VMEM scratch
    return est


# ---------------------------------------------------------------------------
# Kernel.  grid = (batch, q_tile).
#   qt == 0 : qkv_scr = x @ Wqkv_packed + b_packed   (one wide matmul / batch)
#   per qt  : for each head (static loop): scores -> softmax -> P @ V
#             concat heads -> one wide out-projection matmul + bias
# ---------------------------------------------------------------------------
def _attn_kernel(x_ref, wqkv_ref, bqkv_ref, wot_ref, bo_ref, *refs,
                 n_head, d_head, tq, emit_weights):
    if emit_weights:
        out_ref, attnw_ref, qkv_scr = refs
    else:
        out_ref, qkv_scr = refs
        attnw_ref = None

    D = n_head * d_head
    qt = pl.program_id(1)

    # Fused QKV projection for the whole (T, D) slab -- once per batch element.
    @pl.when(qt == 0)
    def _():
        x = x_ref[0]                                           # (T, D) bf16
        qkv = jnp.dot(x, wqkv_ref[...],
                      preferred_element_type=jnp.float32)      # (T, 3D) f32
        qkv_scr[...] = (qkv + bqkv_ref[...]).astype(jnp.bfloat16)

    row = pl.multiple_of(qt * tq, 8)                           # q-tile row base

    ctx_parts = []
    for h in range(n_head):                                    # static head loop
        c = h * d_head                                         # static offsets
        q_h = qkv_scr[pl.ds(row, tq), pl.ds(c, d_head)]        # (tq, dh) bf16
        k_h = qkv_scr[:, pl.ds(D + c, d_head)]                 # (T,  dh) bf16
        v_h = qkv_scr[:, pl.ds(2 * D + c, d_head)]             # (T,  dh) bf16

        # Scores: contract last dims of q and k -> no transpose needed.
        s = jax.lax.dot_general(
            q_h, k_h,
            dimension_numbers=(((1,), (1,)), ((), ())),
            preferred_element_type=jnp.float32)                # (tq, T) f32

        m = jnp.max(s, axis=-1, keepdims=True)
        e = jnp.exp(s - m)
        p = e / jnp.sum(e, axis=-1, keepdims=True)             # exact softmax

        if attnw_ref is not None:
            attnw_ref[0, h] = p.astype(attnw_ref.dtype)

        ctx = jnp.dot(p.astype(jnp.bfloat16), v_h,
                      preferred_element_type=jnp.float32)      # (tq, dh) f32
        ctx_parts.append(ctx.astype(jnp.bfloat16))

    ctx_all = jnp.concatenate(ctx_parts, axis=-1)              # (tq, D) bf16
    out = jnp.dot(ctx_all, wot_ref[...],
                  preferred_element_type=jnp.float32) + bo_ref[...]
    out_ref[0] = out.astype(out_ref.dtype)


def conica_attention(x, wq, bq, wk, bk, wv, bv, wo, bo, n_head, *,
                     tq=None, output_attentions=True,
                     attn_weights_dtype=jnp.float32):
    """Forward pass of ConicaAttention (self-attn, no mask, eval mode)."""
    B, T, D = x.shape
    assert D % n_head == 0
    d_head = D // n_head
    scale = float(d_head) ** (-0.5)

    # Query-axis tile.  At real T this bounds the scores live set and VMEM.
    if tq is None:
        tq = T if T <= 256 else 256
    if T % tq != 0:
        tq = T
    nqt = T // tq
    assert tq == T or tq % 8 == 0

    est = _vmem_bytes_estimate(T, D, n_head, tq, output_attentions)
    assert est <= _VMEM_LIMIT_BYTES, (
        f"VMEM estimate {est} exceeds budget; reduce tq (currently {tq})")

    # ---- host-side packing (XLA ops, outside the kernel) -------------------
    # Packed QKV weight (D, 3D): columns [Q | K | V]; softmax scale folded into
    # the Q columns and bias.  nn.Linear computes x @ W.T + b.
    w_qkv = jnp.concatenate([wq.T * scale, wk.T, wv.T], axis=1)       # (D, 3D)
    b_qkv = jnp.concatenate([bq * scale, bk, bv]).reshape(1, 3 * D)   # (1, 3D)
    wo_t = wo.T                                                       # (D, D)
    bo2 = bo.reshape(1, D)

    # bf16 matmul operands (f32 accumulation inside the kernel).
    x_bf = x.astype(jnp.bfloat16)
    w_qkv = w_qkv.astype(jnp.bfloat16)
    wo_t = wo_t.astype(jnp.bfloat16)
    b_qkv = b_qkv.astype(jnp.float32)
    bo2 = bo2.astype(jnp.float32)

    kernel = functools.partial(_attn_kernel, n_head=n_head, d_head=d_head,
                               tq=tq, emit_weights=output_attentions)

    out_shapes = [jax.ShapeDtypeStruct((B, T, D), x.dtype)]
    out_specs = [pl.BlockSpec((1, tq, D), lambda b, q: (b, q, 0))]
    if output_attentions:
        out_shapes.append(
            jax.ShapeDtypeStruct((B, n_head, T, T), attn_weights_dtype))
        out_specs.append(
            pl.BlockSpec((1, n_head, tq, T), lambda b, q: (b, 0, q, 0)))

    results = pl.pallas_call(
        kernel,
        out_shape=tuple(out_shapes),
        grid_spec=pltpu.PrefetchScalarGridSpec(
            num_scalar_prefetch=0,
            grid=(B, nqt),
            in_specs=[
                pl.BlockSpec((1, T, D), lambda b, q: (b, 0, 0)),        # x
                pl.BlockSpec((D, 3 * D), lambda b, q: (0, 0)),          # Wqkv
                pl.BlockSpec((1, 3 * D), lambda b, q: (0, 0)),          # bqkv
                pl.BlockSpec((D, D), lambda b, q: (0, 0)),              # Wo^T
                pl.BlockSpec((1, D), lambda b, q: (0, 0)),              # bo
            ],
            out_specs=out_specs,
            scratch_shapes=[pltpu.VMEM((T, 3 * D), jnp.bfloat16)],      # qkv
        ),
        compiler_params=pltpu.CompilerParams(
            dimension_semantics=("parallel", "arbitrary"),
            vmem_limit_bytes=_VMEM_LIMIT_BYTES),
    )(x_bf, w_qkv, b_qkv, wo_t, bo2)

    if output_attentions:
        out, attnw = results
        return out, attnw
    (out,) = results
    return out, None


# ---------------------------------------------------------------------------
# Pure-JAX f32 reference (mirrors the PyTorch forward) for verification.
# ---------------------------------------------------------------------------
def reference(x, wq, bq, wk, bk, wv, bv, wo, bo, n_head):
    B, T, D = x.shape
    dh = D // n_head
    scale = float(dh) ** (-0.5)
    q = (x @ wq.T + bq) * scale
    k = x @ wk.T + bk
    v = x @ wv.T + bv

    def shape(t):
        return t.reshape(B, T, n_head, dh).transpose(0, 2, 1, 3)

    q, k, v = shape(q), shape(k), shape(v)
    s = jnp.einsum("bhtd,bhsd->bhts", q, k)
    p = jax.nn.softmax(s, axis=-1)
    o = jnp.einsum("bhts,bhsd->bhtd", p, v)
    o = o.transpose(0, 2, 1, 3).reshape(B, T, D)
    return o @ wo.T + bo, p


if __name__ == "__main__":
    B, T, D, H = 2, 8, 32, 4

    key = jax.random.PRNGKey(0)
    keys = jax.random.split(key, 9)
    x = jax.random.normal(keys[0], (B, T, D), dtype=jnp.float32)
    wq = 0.05 * jax.random.normal(keys[1], (D, D), dtype=jnp.float32)
    wk = 0.05 * jax.random.normal(keys[2], (D, D), dtype=jnp.float32)
    wv = 0.05 * jax.random.normal(keys[3], (D, D), dtype=jnp.float32)
    wo = 0.05 * jax.random.normal(keys[4], (D, D), dtype=jnp.float32)
    bq = 0.01 * jax.random.normal(keys[5], (D,), dtype=jnp.float32)
    bk = 0.01 * jax.random.normal(keys[6], (D,), dtype=jnp.float32)
    bv = 0.01 * jax.random.normal(keys[7], (D,), dtype=jnp.float32)
    bo = 0.01 * jax.random.normal(keys[8], (D,), dtype=jnp.float32)

    out, attnw = conica_attention(x, wq, bq, wk, bk, wv, bv, wo, bo, H,
                                  output_attentions=True)
    out, attnw = jax.block_until_ready((out, attnw))

    # Also exercise the no-attention-weights variant (no O(T^2) writeback).
    out_fast, _ = conica_attention(x, wq, bq, wk, bk, wv, bv, wo, bo, H,
                                   output_attentions=False)
    out_fast = jax.block_until_ready(out_fast)

    ref_out, ref_p = reference(x, wq, bq, wk, bk, wv, bv, wo, bo, H)

    assert out.shape == (B, T, D) and attnw.shape == (B, H, T, T)
    # bf16 matmul operands (f32 accumulate) -> loosen vs. the pure-f32 reference.
    assert jnp.allclose(out, ref_out, atol=2e-2, rtol=2e-2), "attn_output mismatch"
    assert jnp.allclose(attnw, ref_p, atol=2e-2, rtol=2e-2), "attn_weights mismatch"
    assert jnp.allclose(out_fast, out, atol=1e-5, rtol=1e-5), "variant mismatch"

    print("KERNEL_OK")
</pallas_src>

<mosaic_0001>
module attributes {stable_mosaic.version = 11 : i64} {
  func.func @_attn_kernel(%arg0: i32, %arg1: i32, %arg2: memref<1x8x32xbf16, #tpu.memory_space<vmem>>, %arg3: memref<32x96xbf16, #tpu.memory_space<vmem>>, %arg4: memref<1x96xf32, #tpu.memory_space<vmem>>, %arg5: memref<32x32xbf16, #tpu.memory_space<vmem>>, %arg6: memref<1x32xf32, #tpu.memory_space<vmem>>, %arg7: memref<1x8x32xf32, #tpu.memory_space<vmem>>, %arg8: memref<1x4x8x8xf32, #tpu.memory_space<vmem>>, %arg9: memref<8x96xbf16, #tpu.memory_space<vmem>>) attributes {dimension_semantics = [#tpu.dimension_semantics<parallel>, #tpu.dimension_semantics<arbitrary>], iteration_bounds = array<i64: 2, 1>, scalar_prefetch = 0 : i64, scratch_operands = 1 : i64, tpu.core_type = #tpu.core_type<tc>, window_params = [{transform_indices = @transform_0, window_bounds = array<i64: 1, 8, 32>}, {pipeline_mode = #tpu.pipeline_mode<synchronous>, transform_indices = @transform_1, window_bounds = array<i64: 32, 96>}, {pipeline_mode = #tpu.pipeline_mode<synchronous>, transform_indices = @transform_2, window_bounds = array<i64: 1, 96>}, {pipeline_mode = #tpu.pipeline_mode<synchronous>, transform_indices = @transform_3, window_bounds = array<i64: 32, 32>}, {pipeline_mode = #tpu.pipeline_mode<synchronous>, transform_indices = @transform_4, window_bounds = array<i64: 1, 32>}, {transform_indices = @transform_5, window_bounds = array<i64: 1, 8, 32>}, {transform_indices = @transform_6, window_bounds = array<i64: 1, 4, 8, 8>}]} {
    %c0_i32 = arith.constant 0 : i32
    %0 = arith.cmpi eq, %arg1, %c0_i32 : i32
    %1 = arith.extui %0 : i1 to i32
    %c0_i32_0 = arith.constant 0 : i32
    %2 = arith.cmpi ne, %1, %c0_i32_0 : i32
    scf.if %2 {
      %c0_45 = arith.constant 0 : index
      %c0_46 = arith.constant 0 : index
      %c0_47 = arith.constant 0 : index
      %94 = vector.load %arg2[%c0_45, %c0_46, %c0_47] : memref<1x8x32xbf16, #tpu.memory_space<vmem>>, vector<1x8x32xbf16>
      %95 = vector.shape_cast %94 : vector<1x8x32xbf16> to vector<8x32xbf16>
      %c0_48 = arith.constant 0 : index
      %c0_49 = arith.constant 0 : index
      %96 = vector.load %arg3[%c0_48, %c0_49] : memref<32x96xbf16, #tpu.memory_space<vmem>>, vector<32x96xbf16>
      %cst_50 = arith.constant dense<0.000000e+00> : vector<8x96xf32>
      %97 = tpu.matmul %95, %96, %cst_50 {dimension_numbers = #tpu.dot_dimension_numbers<[1], [0], [0], [1], [0, 0, 1, 1], [], []>} : vector<8x32xbf16>, vector<32x96xbf16>, vector<8x96xf32> -> vector<8x96xf32>
      %c0_51 = arith.constant 0 : index
      %c0_52 = arith.constant 0 : index
      %98 = vector.load %arg4[%c0_51, %c0_52] : memref<1x96xf32, #tpu.memory_space<vmem>>, vector<1x96xf32>
      %99 = vector.broadcast %98 : vector<1x96xf32> to vector<8x96xf32>
      %100 = arith.addf %97, %99 : vector<8x96xf32>
      %101 = arith.truncf %100 : vector<8x96xf32> to vector<8x96xbf16>
      %c0_53 = arith.constant 0 : index
      %c0_54 = arith.constant 0 : index
      %102 = vector.load %arg9[%c0_53, %c0_54] : memref<8x96xbf16, #tpu.memory_space<vmem>>, vector<8x96xbf16>
      tpu.vector_store %arg9[%c0_53, %c0_54], %101 {strides = array<i32>} : memref<8x96xbf16, #tpu.memory_space<vmem>>, vector<8x96xbf16>,
    } else {
    }
    %c8_i32 = arith.constant 8 : i32
    %3 = arith.muli %arg1, %c8_i32 : i32
    %4 = tpu.assume_multiple %3, 8 : i32
    %5 = arith.index_cast %4 : i32 to index
    %c0 = arith.constant 0 : index
    %6 = vector.load %arg9[%5, %c0] : memref<8x96xbf16, #tpu.memory_space<vmem>>, vector<8x8xbf16>
    %c0_1 = arith.constant 0 : index
    %c32 = arith.constant 32 : index
    %7 = vector.load %arg9[%c0_1, %c32] : memref<8x96xbf16, #tpu.memory_space<vmem>>, vector<8x8xbf16>
    %c0_2 = arith.constant 0 : index
    %c64 = arith.constant 64 : index
    %8 = vector.load %arg9[%c0_2, %c64] : memref<8x96xbf16, #tpu.memory_space<vmem>>, vector<8x8xbf16>
    %cst = arith.constant dense<0.000000e+00> : vector<8x8xf32>
    %9 = tpu.matmul %6, %7, %cst {dimension_numbers = #tpu.dot_dimension_numbers<[1], [1], [0], [0], [0, 0, 1, 0], [], []>} : vector<8x8xbf16>, vector<8x8xbf16>, vector<8x8xf32> -> vector<8x8xf32>
    %cst_3 = arith.constant dense<0xFF800000> : vector<8xf32>
    %10 = vector.multi_reduction <maximumf>, %9, %cst_3 [1] : vector<8x8xf32> to vector<8xf32>
    %11 = vector.shape_cast %10 : vector<8xf32> to vector<8x1xf32>
    %12 = vector.broadcast %11 : vector<8x1xf32> to vector<8x8xf32>
    %13 = arith.subf %9, %12 : vector<8x8xf32>
    %14 = math.exp %13 : vector<8x8xf32>
    %cst_4 = arith.constant dense<0.000000e+00> : vector<8xf32>
    %15 = vector.multi_reduction <add>, %14, %cst_4 [1] : vector<8x8xf32> to vector<8xf32>
    %16 = vector.shape_cast %15 : vector<8xf32> to vector<8x1xf32>
    %17 = vector.broadcast %16 : vector<8x1xf32> to vector<8x8xf32>
    %18 = arith.divf %14, %17 : vector<8x8xf32>
    %c0_5 = arith.constant 0 : index
    %c0_6 = arith.constant 0 : index
    %c0_7 = arith.constant 0 : index
    %c0_8 = arith.constant 0 : index
    %19 = vector.load %arg8[%c0_5, %c0_6, %c0_7, %c0_8] : memref<1x4x8x8xf32, #tpu.memory_space<vmem>>, vector<1x1x8x8xf32>
    %20 = vector.shape_cast %19 : vector<1x1x8x8xf32> to vector<8x8xf32>
    %21 = vector.shape_cast %18 : vector<8x8xf32> to vector<1x1x8x8xf32>
    tpu.vector_store %arg8[%c0_5, %c0_6, %c0_7, %c0_8], %21 {strides = array<i32>} : memref<1x4x8x8xf32, #tpu.memory_space<vmem>>, vector<1x1x8x8xf32>,
    %22 = arith.truncf %18 : vector<8x8xf32> to vector<8x8xbf16>
    %cst_9 = arith.constant dense<0.000000e+00> : vector<8x8xf32>
    %23 = tpu.matmul %22, %8, %cst_9 {dimension_numbers = #tpu.dot_dimension_numbers<[1], [0], [0], [1], [0, 0, 1, 1], [], []>} : vector<8x8xbf16>, vector<8x8xbf16>, vector<8x8xf32> -> vector<8x8xf32>
    %24 = arith.truncf %23 : vector<8x8xf32> to vector<8x8xbf16>
    %25 = arith.index_cast %4 : i32 to index
    %c8 = arith.constant 8 : index
    %26 = vector.load %arg9[%25, %c8] : memref<8x96xbf16, #tpu.memory_space<vmem>>, vector<8x8xbf16>
    %c0_10 = arith.constant 0 : index
    %c40 = arith.constant 40 : index
    %27 = vector.load %arg9[%c0_10, %c40] : memref<8x96xbf16, #tpu.memory_space<vmem>>, vector<8x8xbf16>
    %c0_11 = arith.constant 0 : index
    %c72 = arith.constant 72 : index
    %28 = vector.load %arg9[%c0_11, %c72] : memref<8x96xbf16, #tpu.memory_space<vmem>>, vector<8x8xbf16>
    %cst_12 = arith.constant dense<0.000000e+00> : vector<8x8xf32>
    %29 = tpu.matmul %26, %27, %cst_12 {dimension_numbers = #tpu.dot_dimension_numbers<[1], [1], [0], [0], [0, 0, 1, 0], [], []>} : vector<8x8xbf16>, vector<8x8xbf16>, vector<8x8xf32> -> vector<8x8xf32>
    %cst_13 = arith.constant dense<0xFF800000> : vector<8xf32>
    %30 = vector.multi_reduction <maximumf>, %29, %cst_13 [1] : vector<8x8xf32> to vector<8xf32>
    %31 = vector.shape_cast %30 : vector<8xf32> to vector<8x1xf32>
    %32 = vector.broadcast %31 : vector<8x1xf32> to vector<8x8xf32>
    %33 = arith.subf %29, %32 : vector<8x8xf32>
    %34 = math.exp %33 : vector<8x8xf32>
    %cst_14 = arith.constant dense<0.000000e+00> : vector<8xf32>
    %35 = vector.multi_reduction <add>, %34, %cst_14 [1] : vector<8x8xf32> to vector<8xf32>
    %36 = vector.shape_cast %35 : vector<8xf32> to vector<8x1xf32>
    %37 = vector.broadcast %36 : vector<8x1xf32> to vector<8x8xf32>
    %38 = arith.divf %34, %37 : vector<8x8xf32>
    %c0_15 = arith.constant 0 : index
    %c1 = arith.constant 1 : index
    %c0_16 = arith.constant 0 : index
    %c0_17 = arith.constant 0 : index
    %39 = vector.load %arg8[%c0_15, %c1, %c0_16, %c0_17] : memref<1x4x8x8xf32, #tpu.memory_space<vmem>>, vector<1x1x8x8xf32>
    %40 = vector.shape_cast %39 : vector<1x1x8x8xf32> to vector<8x8xf32>
    %41 = vector.shape_cast %38 : vector<8x8xf32> to vector<1x1x8x8xf32>
    tpu.vector_store %arg8[%c0_15, %c1, %c0_16, %c0_17], %41 {strides = array<i32>} : memref<1x4x8x8xf32, #tpu.memory_space<vmem>>, vector<1x1x8x8xf32>,
    %42 = arith.truncf %38 : vector<8x8xf32> to vector<8x8xbf16>
    %cst_18 = arith.constant dense<0.000000e+00> : vector<8x8xf32>
    %43 = tpu.matmul %42, %28, %cst_18 {dimension_numbers = #tpu.dot_dimension_numbers<[1], [0], [0], [1], [0, 0, 1, 1], [], []>} : vector<8x8xbf16>, vector<8x8xbf16>, vector<8x8xf32> -> vector<8x8xf32>
    %44 = arith.truncf %43 : vector<8x8xf32> to vector<8x8xbf16>
    %45 = arith.index_cast %4 : i32 to index
    %c16 = arith.constant 16 : index
    %46 = vector.load %arg9[%45, %c16] : memref<8x96xbf16, #tpu.memory_space<vmem>>, vector<8x8xbf16>
    %c0_19 = arith.constant 0 : index
    %c48 = arith.constant 48 : index
    %47 = vector.load %arg9[%c0_19, %c48] : memref<8x96xbf16, #tpu.memory_space<vmem>>, vector<8x8xbf16>
    %c0_20 = arith.constant 0 : index
    %c80 = arith.constant 80 : index
    %48 = vector.load %arg9[%c0_20, %c80] : memref<8x96xbf16, #tpu.memory_space<vmem>>, vector<8x8xbf16>
    %cst_21 = arith.constant dense<0.000000e+00> : vector<8x8xf32>
    %49 = tpu.matmul %46, %47, %cst_21 {dimension_numbers = #tpu.dot_dimension_numbers<[1], [1], [0], [0], [0, 0, 1, 0], [], []>} : vector<8x8xbf16>, vector<8x8xbf16>, vector<8x8xf32> -> vector<8x8xf32>
    %cst_22 = arith.constant dense<0xFF800000> : vector<8xf32>
    %50 = vector.multi_reduction <maximumf>, %49, %cst_22 [1] : vector<8x8xf32> to vector<8xf32>
    %51 = vector.shape_cast %50 : vector<8xf32> to vector<8x1xf32>
    %52 = vector.broadcast %51 : vector<8x1xf32> to vector<8x8xf32>
    %53 = arith.subf %49, %52 : vector<8x8xf32>
    %54 = math.exp %53 : vector<8x8xf32>
    %cst_23 = arith.constant dense<0.000000e+00> : vector<8xf32>
    %55 = vector.multi_reduction <add>, %54, %cst_23 [1] : vector<8x8xf32> to vector<8xf32>
    %56 = vector.shape_cast %55 : vector<8xf32> to vector<8x1xf32>
    %57 = vector.broadcast %56 : vector<8x1xf32> to vector<8x8xf32>
    %58 = arith.divf %54, %57 : vector<8x8xf32>
    %c0_24 = arith.constant 0 : index
    %c2 = arith.constant 2 : index
    %c0_25 = arith.constant 0 : index
    %c0_26 = arith.constant 0 : index
    %59 = vector.load %arg8[%c0_24, %c2, %c0_25, %c0_26] : memref<1x4x8x8xf32, #tpu.memory_space<vmem>>, vector<1x1x8x8xf32>
    %60 = vector.shape_cast %59 : vector<1x1x8x8xf32> to vector<8x8xf32>
    %61 = vector.shape_cast %58 : vector<8x8xf32> to vector<1x1x8x8xf32>
    tpu.vector_store %arg8[%c0_24, %c2, %c0_25, %c0_26], %61 {strides = array<i32>} : memref<1x4x8x8xf32, #tpu.memory_space<vmem>>, vector<1x1x8x8xf32>,
    %62 = arith.truncf %58 : vector<8x8xf32> to vector<8x8xbf16>
    %cst_27 = arith.constant dense<0.000000e+00> : vector<8x8xf32>
    %63 = tpu.matmul %62, %48, %cst_27 {dimension_numbers = #tpu.dot_dimension_numbers<[1], [0], [0], [1], [0, 0, 1, 1], [], []>} : vector<8x8xbf16>, vector<8x8xbf16>, vector<8x8xf32> -> vector<8x8xf32>
    %64 = arith.truncf %63 : vector<8x8xf32> to vector<8x8xbf16>
    %65 = arith.index_cast %4 : i32 to index
    %c24 = arith.constant 24 : index
    %66 = vector.load %arg9[%65, %c24] : memref<8x96xbf16, #tpu.memory_space<vmem>>, vector<8x8xbf16>
    %c0_28 = arith.constant 0 : index
    %c56 = arith.constant 56 : index
    %67 = vector.load %arg9[%c0_28, %c56] : memref<8x96xbf16, #tpu.memory_space<vmem>>, vector<8x8xbf16>
    %c0_29 = arith.constant 0 : index
    %c88 = arith.constant 88 : index
    %68 = vector.load %arg9[%c0_29, %c88] : memref<8x96xbf16, #tpu.memory_space<vmem>>, vector<8x8xbf16>
    %cst_30 = arith.constant dense<0.000000e+00> : vector<8x8xf32>
    %69 = tpu.matmul %66, %67, %cst_30 {dimension_numbers = #tpu.dot_dimension_numbers<[1], [1], [0], [0], [0, 0, 1, 0], [], []>} : vector<8x8xbf16>, vector<8x8xbf16>, vector<8x8xf32> -> vector<8x8xf32>
    %cst_31 = arith.constant dense<0xFF800000> : vector<8xf32>
    %70 = vector.multi_reduction <maximumf>, %69, %cst_31 [1] : vector<8x8xf32> to vector<8xf32>
    %71 = vector.shape_cast %70 : vector<8xf32> to vector<8x1xf32>
    %72 = vector.broadcast %71 : vector<8x1xf32> to vector<8x8xf32>
    %73 = arith.subf %69, %72 : vector<8x8xf32>
    %74 = math.exp %73 : vector<8x8xf32>
    %cst_32 = arith.constant dense<0.000000e+00> : vector<8xf32>
    %75 = vector.multi_reduction <add>, %74, %cst_32 [1] : vector<8x8xf32> to vector<8xf32>
    %76 = vector.shape_cast %75 : vector<8xf32> to vector<8x1xf32>
    %77 = vector.broadcast %76 : vector<8x1xf32> to vector<8x8xf32>
    %78 = arith.divf %74, %77 : vector<8x8xf32>
    %c0_33 = arith.constant 0 : index
    %c3 = arith.constant 3 : index
    %c0_34 = arith.constant 0 : index
    %c0_35 = arith.constant 0 : index
    %79 = vector.load %arg8[%c0_33, %c3, %c0_34, %c0_35] : memref<1x4x8x8xf32, #tpu.memory_space<vmem>>, vector<1x1x8x8xf32>
    %80 = vector.shape_cast %79 : vector<1x1x8x8xf32> to vector<8x8xf32>
    %81 = vector.shape_cast %78 : vector<8x8xf32> to vector<1x1x8x8xf32>
    tpu.vector_store %arg8[%c0_33, %c3, %c0_34, %c0_35], %81 {strides = array<i32>} : memref<1x4x8x8xf32, #tpu.memory_space<vmem>>, vector<1x1x8x8xf32>,
    %82 = arith.truncf %78 : vector<8x8xf32> to vector<8x8xbf16>
    %cst_36 = arith.constant dense<0.000000e+00> : vector<8x8xf32>
    %83 = tpu.matmul %82, %68, %cst_36 {dimension_numbers = #tpu.dot_dimension_numbers<[1], [0], [0], [1], [0, 0, 1, 1], [], []>} : vector<8x8xbf16>, vector<8x8xbf16>, vector<8x8xf32> -> vector<8x8xf32>
    %84 = arith.truncf %83 : vector<8x8xf32> to vector<8x8xbf16>
    %85 = tpu.concatenate %24, %44, %64, %84 in 1 : vector<8x8xbf16>, vector<8x8xbf16>, vector<8x8xbf16>, vector<8x8xbf16> -> vector<8x32xbf16>
    %c0_37 = arith.constant 0 : index
    %c0_38 = arith.constant 0 : index
    %86 = vector.load %arg5[%c0_37, %c0_38] : memref<32x32xbf16, #tpu.memory_space<vmem>>, vector<32x32xbf16>
    %cst_39 = arith.constant dense<0.000000e+00> : vector<8x32xf32>
    %87 = tpu.matmul %85, %86, %cst_39 {dimension_numbers = #tpu.dot_dimension_numbers<[1], [0], [0], [1], [0, 0, 1, 1], [], []>} : vector<8x32xbf16>, vector<32x32xbf16>, vector<8x32xf32> -> vector<8x32xf32>
    %c0_40 = arith.constant 0 : index
    %c0_41 = arith.constant 0 : index
    %88 = vector.load %arg6[%c0_40, %c0_41] : memref<1x32xf32, #tpu.memory_space<vmem>>, vector<1x32xf32>
    %89 = vector.broadcast %88 : vector<1x32xf32> to vector<8x32xf32>
    %90 = arith.addf %87, %89 : vector<8x32xf32>
    %c0_42 = arith.constant 0 : index
    %c0_43 = arith.constant 0 : index
    %c0_44 = arith.constant 0 : index
    %91 = vector.load %arg7[%c0_42, %c0_43, %c0_44] : memref<1x8x32xf32, #tpu.memory_space<vmem>>, vector<1x8x32xf32>
    %92 = vector.shape_cast %91 : vector<1x8x32xf32> to vector<8x32xf32>
    %93 = vector.shape_cast %90 : vector<8x32xf32> to vector<1x8x32xf32>
    tpu.vector_store %arg7[%c0_42, %c0_43, %c0_44], %93 {strides = array<i32>} : memref<1x8x32xf32, #tpu.memory_space<vmem>>, vector<1x8x32xf32>,
    return
  }
  func.func @transform_0(%arg0: i32, %arg1: i32) -> (i32, i32, i32) {
    %c0_i32 = arith.constant 0 : i32
    %c0_i32_0 = arith.constant 0 : i32
    %c0_i32_1 = arith.constant 0 : i32
    return %arg0, %c0_i32, %c0_i32_0 : i32, i32, i32
  }
  func.func @transform_1(%arg0: i32, %arg1: i32) -> (i32, i32) {
    %c0_i32 = arith.constant 0 : i32
    %c0_i32_0 = arith.constant 0 : i32
    %c0_i32_1 = arith.constant 0 : i32
    return %c0_i32, %c0_i32_0 : i32, i32
  }
  func.func @transform_2(%arg0: i32, %arg1: i32) -> (i32, i32) {
    %c0_i32 = arith.constant 0 : i32
    %c0_i32_0 = arith.constant 0 : i32
    %c0_i32_1 = arith.constant 0 : i32
    return %c0_i32, %c0_i32_0 : i32, i32
  }
  func.func @transform_3(%arg0: i32, %arg1: i32) -> (i32, i32) {
    %c0_i32 = arith.constant 0 : i32
    %c0_i32_0 = arith.constant 0 : i32
    %c0_i32_1 = arith.constant 0 : i32
    return %c0_i32, %c0_i32_0 : i32, i32
  }
  func.func @transform_4(%arg0: i32, %arg1: i32) -> (i32, i32) {
    %c0_i32 = arith.constant 0 : i32
    %c0_i32_0 = arith.constant 0 : i32
    %c0_i32_1 = arith.constant 0 : i32
    return %c0_i32, %c0_i32_0 : i32, i32
  }
  func.func @transform_5(%arg0: i32, %arg1: i32) -> (i32, i32, i32) {
    %c0_i32 = arith.constant 0 : i32
    %c0_i32_0 = arith.constant 0 : i32
    return %arg0, %arg1, %c0_i32 : i32, i32, i32
  }
  func.func @transform_6(%arg0: i32, %arg1: i32) -> (i32, i32, i32, i32) {
    %c0_i32 = arith.constant 0 : i32
    %c0_i32_0 = arith.constant 0 : i32
    %c0_i32_1 = arith.constant 0 : i32
    return %arg0, %c0_i32, %arg1, %c0_i32_0 : i32, i32, i32, i32
  }
}

</mosaic_0001>

<bundles_post_ra>
// kernel: tpu_custom_call.1
= control target key start
LH: loop header
LB: loop body
LE: loop exit
PB: predicated region body
PF: predicated region fallthrough
CT: control target
= control target key end

     0   :  { %12 = vsyncpa [#allocation4], 0  ;;  %s2052_s0 = inlined_call_operand.hbm [shape: bf16[2,8,32], index: 0, kind: input, shape index: {}]   ;;  %s2053_s1 = inlined_call_operand.hbm [shape: bf16[32,96], index: 1, kind: input, shape index: {}]   ;;  %s2054_s2 = inlined_call_operand.vmem [shape: f32[1,96], index: 2, kind: input, shape index: {}]   ;;  %s2055_s3 = inlined_call_operand.hbm [shape: bf16[32,32], index: 3, kind: input, shape index: {}]   ;;  %s2056_s4 = inlined_call_operand.vmem [shape: f32[1,32], index: 4, kind: input, shape index: {}]   ;;  %s2057_s5 = inlined_call_operand.hbm [shape: f32[2,8,32], index: 5, kind: output, shape index: {0}]   ;;  %s2058_s6 = inlined_call_operand.hbm [shape: f32[2,4,8,8], index: 6, kind: output, shape index: {1}]  }
   0x1   :  { %14 = vsyncpa [#allocation4 + $0x1], 0 }
   0x2   :  { %15 = vsyncpa [#allocation7], 0 }
   0x3   :  { %16 = vsyncpa [#allocation5], 0 }
   0x4   :  { %18 = vsyncpa [#allocation5 + $0x1], 0 }
   0x5   :  { %19 = vsyncpa [#allocation11], 0 }
   0x6   :  { %21 = vsyncpa [#allocation11 + $0x1], 0  ;;  %s1673_s21 = smov 0   ;;  %s1675_s22 = smov 0  }
   0x7   :  { %s1677_s23 = smov 0   ;;  %s1679_s24 = smov 0  }
   0x8   :  { %s1681_s25 = smov 0   ;;  %s1683_s26 = smov 0  }
   0x9 LB: > { %s1140_s27 = sadd.s32 4294967295, %s1612_s26   ;;  %s1141_s28 = sadd.s32 4294967294, %s1612_s26   ;;  %s1612_s26 = sphi %s1683_s26, %s27_s26   ;;  %s1608_s25 = sphi %s1681_s25, %s2083_s25   ;;  %s1604_s24 = sphi %s1679_s24, %s2082_s24   ;;  %s1600_s23 = sphi %s1677_s23, %s2081_s23   ;;  %s1596_s22 = sphi %s1675_s22, %s2080_s22   ;;  %s1592_s21 = sphi %s1673_s21, %s2079_s21  }
   0xa   : > { %p59_p0 = scmp.ne.s32.totalorder %s1596_s22, %s1592_s21  ;;  %p1707_p1 = scmp.eq.s32.totalorder %s1140_s27, 0 }
   0xb   : > { %p1711_p2 = scmp.eq.s32.totalorder %s1140_s27, 1  ;;  %p175_p3 = scmp.eq.s32.totalorder %s1141_s28, 1 }
   0xc   : > { %s2064_s29 = scalar_select %p1707_p1, 1, 0 }
   0xd   : > { %p1717_p4 = por %p1707_p1, %p59_p0  ;;  %p1142_p5 = scmp.ge.s32.totalorder %s1612_s26, 1 }
   0xe   : > { %p1722_p6 = por %p175_p3, %p59_p0  ;;  %p210_p7 = scmp.lt.s32.totalorder %s1612_s26, 3 }
   0xf   : > { %s2066_s7 = scalar_select %p1717_p4, 1, 0 }
  0x10   : > { %s2067_s8 = scalar_select %p1722_p6, 1, 0 }
  0x11   : > { %p1727_p8 = pnand %p1142_p5, %p210_p7  ;;  %s1614_s10 = smov [#allocation6]  }
  0x12   : > { %2068 = sst [smem:[#allocation16_spill]] %s2067_s8  ;;  %s222_s11 = sshll.u32 %s1614_s10, 4  ;;  %s1731_s11 = int_to_ptr.vmem [resolvable:$true] %s222_s11 }
  0x13   : > { %p1288_p9 = pneg %p1727_p8  ;;  %s1615_s13 = smov [#allocation8]  }
  0x14   : > { %s238_s14 = sshll.u32 %s1615_s13, 4  ;;  %s1408_s17 = scalar_lea.hbm %s2053_s1, 256  ;;  %s1742_s14 = int_to_ptr.vmem [resolvable:$true] %s238_s14 }
  0x15   : > { %p1738_p11 = pnand %p1288_p9, %p1707_p1  ;;  %p1409_p12 = scmp.ne.s32.totalorder %s2053_s1, %s1408_s17 }
  0x16   : > { %p1415_p5 = scmp.lt.u32.totalorder %s1408_s17, %s2053_s1 }
  0x17   : > { %p1410_p13 = pneg %p1738_p11 }
  0x19   : > { %p1411_p0 = pnand %p1410_p13, %p1409_p12 }
  0x1b   : > { %p1412_p3 = pneg %p1411_p0 }
  0x1d   : > { %p1417_p7 = pnand %p1415_p5, %p1412_p3 }
  0x1f   : > { %1420 = shalt.err (!%p1417_p7)
}
  0x20   : > { %s1421_s28 = scalar_lea.vmem %s1731_s11, 256  ;;  %p1429_p1 = scmp.lt.s32.totalorder %s1731_s11, %s1731_s11 }
  0x21   : > { %p1422_p9 = scmp.ne.s32.totalorder %s1731_s11, %s1421_s28  ;;  %p1430_p12 = scmp.lt.s32.totalorder %s1421_s28, %s1421_s28 }
  0x23   : > { %p1424_p10 = pnand %p1422_p9, %p1410_p13  ;;  %p1431_p0 = por %p1430_p12, %p1429_p1 }
  0x25   : > { %p1425_p6 = pneg %p1424_p10 }
  0x27   : > { %p1432_p4 = pnand %p1431_p0, %p1425_p6 }
  0x29   : > { %1435 = shalt.err (!%p1432_p4)
}
  0x2a   : > { %s1616_s10 = smov 64   ;;  %s1617_s13 = smov 4  }
  0x2b   : > { %1291 = dma.hbm_to_vmem [thread:$0]  (!%p1738_p11), %s2053_s1, 256, %s1731_s11, [#allocation7], %s1616_s10, %s1616_s10, %s1617_s13  }
  0x2c   : > { %s1436_s19 = scalar_lea.hbm %s2055_s3, 256 }
  0x2d   : > { %p1437_p1 = scmp.ne.s32.totalorder %s2055_s3, %s1436_s19  ;;  %p1443_p10 = scmp.lt.u32.totalorder %s1436_s19, %s2055_s3 }
  0x2f   : > { %p1439_p4 = pnand %p1437_p1, %p1410_p13 }
  0x31   : > { %p1440_p6 = pneg %p1439_p4 }
  0x33   : > { %p1445_p3 = pnand %p1443_p10, %p1440_p6 }
  0x35   : > { %1448 = shalt.err (!%p1445_p3)
}
  0x36   : > { %s1449_s11 = scalar_lea.vmem %s1742_s14, 256  ;;  %p1457_p12 = scmp.lt.s32.totalorder %s1742_s14, %s1742_s14 }
  0x37   : > { %p1450_p5 = scmp.ne.s32.totalorder %s1742_s14, %s1449_s11  ;;  %p1458_p0 = scmp.lt.s32.totalorder %s1449_s11, %s1449_s11 }
  0x39   : > { %p1452_p7 = pnand %p1450_p5, %p1410_p13  ;;  %p1459_p1 = por %p1458_p0, %p1457_p12 }
  0x3b   : > { %p1453_p9 = pneg %p1452_p7 }
  0x3d   : > { %p1460_p4 = pnand %p1459_p1, %p1453_p9 }
  0x3f   : > { %1463 = shalt.err (!%p1460_p4)
}
  0x40   : > { %1294 = dma.hbm_to_vmem [thread:$0]  (!%p1738_p11), %s2055_s3, 256, %s1742_s14, [#allocation7], %s1616_s10, %s1616_s10, %s1617_s13  }
  0x41   : > { %s39_s16 = sadd.s32 1, %s1608_s25  ;;  %s46_s17 = sadd.s32 1, %s1600_s23 }
  0x42   : > { %p41_p13 = scmp.ge.s32.totalorder %s39_s16, 2  ;;  %p53_p6 = scmp.ne.s32.totalorder %s1600_s23, %s1596_s22 }
  0x43   : > { %p54_p10 = scmp.eq.s32.totalorder %s1612_s26, 0  ;;  %p1308_p3 = scmp.lt.s32.totalorder %s1612_s26, 2 }
  0x44   : > { %s2085_s16 = smov (%p41_p13, %s39_s16), 0  ;;  %p1806_p7 = por %p1711_p2, %p53_p6 }
  0x45   : > { %p55_p5 = por %p54_p10, %p53_p6  ;;  %s43_s18 = ssub.s32 %s1608_s25, %s2085_s16 }
  0x46   : > { %s2071_s12 = scalar_select %p1806_p7, 1, 0 }
  0x47   : > { %s255_s19 = sand.u32 1, %s1600_s23   ;;  %p44_p9 = scmp.eq.s32.totalorder %s43_s18, 0 }
  0x48   : > { %s1146_s14 = sshll.u32 %s255_s19, 2  ;;  %s1147_s10 = sshll.u32 %s1608_s25, 6 }
  0x49   : > { %s1815_s13 = scalar_select %p44_p9, %s1600_s23, %s46_s17  }
  0x4a   : > { %s1820_s28 = scalar_lea.hbm %s2052_s0, %s1147_s10  ;;  %s259_s30 = scalar_lea.vmem [#allocation3], %s1146_s14 }
  0x4b   : > { %s266_s11 = sshll.u32 %s259_s30, 4  ;;  %p1824_p2 = pnand %p1308_p3, %p55_p5  ;;  %s1828_s11 = int_to_ptr.vmem [resolvable:$true] %s266_s11 }
  0x4c   : > { %s256_s15 = scalar_lea.sflag [#allocation4], %s255_s19  ;;  %s1464_s17 = scalar_lea.hbm %s1820_s28, 64 }
  0x4d   : > { %p1465_p11 = scmp.ne.s32.totalorder %s1820_s28, %s1464_s17  ;;  %p1466_p12 = pneg %p1824_p2 }
  0x4e   : > { %s1469_s10 = scalar_lea.hbm %s2052_s0, 128  ;;  %p1470_p4 = scmp.lt.u32.totalorder %s1820_s28, %s2052_s0 }
  0x4f   : > { %p1467_p0 = pnand %p1466_p12, %p1465_p11  ;;  %p1471_p13 = scmp.lt.u32.totalorder %s1469_s10, %s1464_s17 }
  0x50   : > { %p1473_p10 = scmp.lt.u32.totalorder %s1464_s17, %s1820_s28 }
  0x51   : > { %p1468_p1 = pneg %p1467_p0  ;;  %p1472_p6 = por %p1471_p13, %p1470_p4 }
  0x53   : > { %p1474_p3 = por %p1473_p10, %p1472_p6 }
  0x55   : > { %p1475_p5 = pnand %p1474_p3, %p1468_p1 }
  0x57   : > { %1478 = shalt.err (!%p1475_p5)
}
  0x58   : > { %s1479_s19 = scalar_lea.vmem %s1828_s11, 64  ;;  %s1618_s30 = smov [#allocation3]  }
  0x59   : > { %p1480_p9 = scmp.ne.s32.totalorder %s1828_s11, %s1479_s19  ;;  %s1484_s18 = sshll.u32 %s1618_s30, 4  ;;  %s1485_s18 = int_to_ptr.vmem [resolvable:$false] %s1484_s18 }
  0x5a   : > { %s1486_s14 = scalar_lea.vmem %s1485_s18, 128  ;;  %p1487_p7 = scmp.lt.s32.totalorder %s1828_s11, %s1485_s18 }
  0x5b   : > { %p1482_p11 = pnand %p1480_p9, %p1466_p12  ;;  %p1488_p4 = scmp.lt.s32.totalorder %s1486_s14, %s1479_s19 }
  0x5d   : > { %p1483_p0 = pneg %p1482_p11  ;;  %p1489_p13 = por %p1488_p4, %p1487_p7 }
  0x5f   : > { %p1490_p6 = pnand %p1489_p13, %p1483_p0 }
  0x61   : > { %1493 = shalt.err (!%p1490_p6)
}
  0x62   : > { %1298 = dma.hbm_to_vmem [thread:$0]  (!%p1824_p2), %s1820_s28, 64, %s1828_s11, %s256_s15  }
  0x63   : > { %275 = sbr.rel (%p1727_p8) target bundleno = 1616 (0x650), region = 40  ;;  %s1858_s17 = sand.u32 (!%p1727_p8), 1, %s1596_s22  }
  0x64   : > { %s1149_s10 = sshll.u32 (!%p1727_p8), %s1858_s17, 2  ;;  %s278_s20 = scalar_lea.sflag (!%p1727_p8), [#allocation4], %s1858_s17 }
  0x65   : > { %s281_s27 = scalar_lea.vmem (!%p1727_p8), [#allocation3], %s1149_s10  ;;  %p2073_p7 = scmp.ne.s32.totalorder (!%p1727_p8), %s2066_s7, 0 }
  0x6a   : > { %1575 = dma.done.wait (%p2073_p7), %s278_s20, 64  }
  0x6b   : > { %1577 = vsyncadd (%p2073_p7), %s278_s20, 4294967232  ;;  %p2074_p12 = scmp.ne.s32.totalorder %s2064_s29, 0 }
  0x6d   : > { %1579 = dma.done.wait (%p2074_p12), [#allocation7], 512  }
  0x6e   : > { %1581 = vsyncadd (%p2074_p12), [#allocation7], 4294966784  ;;  %v1619_v0 = vmov 0.0   ;;  %vm1620_vm0 = vmmov 0   ;;  %v1381_v1 = vld [vmem:[#allocation6] sm:$0xff]   ;;  %v1382_v2 = vld [vmem:[#allocation6 + $0x8] sm:$0xff]  }
  0x6f   : > { %1210 = vmatprep.subr.bf16.mxu0 %v1619_v0  ;;  %1214 = vmatprep.mubr.msk.bf16.mxu0 %vm1620_vm0, %v1619_v0  ;;  %v328_v3 = vld [vmem:[%s281_s27] sm:$0xf]  ;;  %vm352_vm1 = vcmask 261120   ;;  %v1154_v4 = vld [vmem:[%s2054_s2] ss:$0 sm:$0xff]  ;;  %vm397_vm2 = vcmask 781312  }
  0x70   : > { %1218 = vmatprep.subr.bf16.mxu1 %v1619_v0  ;;  %1220 = vmatprep.mubr.msk.bf16.mxu1 %vm1620_vm0, %v1619_v0  ;;  %s1621_s9 = smov 120   ;;  %s1622_s28 = smov 96   ;;  %vm411_vm3 = vcmask 64512   ;;  %vm476_vm4 = vcmask 1043456   ;;  %vm896_vm5 = vcmask 130048   ;;  %vm899_vm6 = vcmask 195584  }
  0x71   : > { %1211 = vmatpush3.bf16.msra.mxu0 %v1381_v1  ;;  %s1623_s11 = smov 80   ;;  %s1624_s8 = smov 88  }
  0x72   : > { %1212 = vmatprep.subr.bf16.mxu0 %v1619_v0  ;;  %s1625_s15 = smov 72   ;;  %s1626_s19 = smov 112  }
  0x73   : > { %s1627_s30 = smov 104   ;;  %s1628_s18 = smov 56  }
  0x74   : > { %s1629_s14 = smov 64   ;;  %s1630_s10 = smov 40  }
  0x75   : > { %1213 = vmatpush3.bf16.msra.mxu0 %v1382_v2  ;;  %s1631_s20 = smov 48   ;;  %s1153_s27 = sshll.u32 %s1858_s17, 5 }
  0x76   : > { %1224 = vmatprep.subr.bf16.mxu0 %v1619_v0  ;;  %s1929_s29 = scalar_lea.vmem [#allocation10], %s1153_s27  ;;  %s1632_s7 = smov 8  }
  0x77   : > { %p2075_p2 = scmp.ne.s32.totalorder %s2071_s12, 0 }
  0x78   : > { %1215 = vmatmul.mubr.msk.bf16.vlgmr.msra.gmra.mrb[0].mxu0 %vm352_vm1, %v328_v3 }
  0x79   : > { %1226 = vmatprep.mubr.msk.bf16.mxu0 %vm1620_vm0, %v1619_v0 }
 0x14b   : > { %v390_v5 = vpop.f32.mrb[0].mxu0 }
 0x14c   : > { %v391_v6 = vadd.f32 %v1154_v4, %v390_v5  ;;  %v1216_v7 = vpop.f32.mrb[1].mxu0 }
 0x14d   : > { %v393_v8 = vpop.f32.mrb[2].mxu0 }
 0x14e   : > { %v396_v9 = vpack.c.bf16 %v391_v6, %v391_v6  ;;  %v1217_v10 = vpop.f32.mrb[3].mxu0 }
 0x150   : > { %398 = vst.msk [vmem:[#allocation2] sm:$0xf] %vm397_vm2, %v396_v9 }
 0x157   : > { %v1383_v11 = vld [vmem:[#allocation2] ss:$0 sps:$4 sm:$0xff]  }
 0x158   : > { %v1884_v12 = vld [vmem:[#allocation2] ss:$0 sps:$4 sm:$0xff]   ;;  %526 = vrot.lane.b32.xlu1 %v1383_v11, %s1621_s9  ;;  %s1633_s9 = smov 16  }
 0x159   : > { %409 = vrot.lane.b32.xlu0 %v1884_v12, %s1622_s28  ;;  %v1887_v13 = vld [vmem:[#allocation2] ss:$0 sps:$4 sm:$0xff]   ;;  %s1634_s28 = smov 24  }
 0x15a   : > { %v1889_v14 = vld [vmem:[#allocation2] ss:$0 sps:$4 sm:$0xff]  }
 0x15b   : > { %v1893_v15 = vld [vmem:[#allocation2] ss:$0 sps:$4 sm:$0xff]  }
 0x15c   : > { %652 = vrot.lane.b32.xlu1 %v1887_v13, %s1623_s11  ;;  %v1388_v16 = vld [vmem:[#allocation2] ss:$0 sps:$4 sm:$0xff]   ;;  %s1187_s11 = sshll.u32 %s1604_s24, 9 }
 0x15d   : > { %531 = vrot.lane.b32.xlu0 %v1889_v14, %s1624_s8  ;;  %v1389_v17 = vld [vmem:[#allocation2] ss:$0 sps:$4 sm:$0xff]   ;;  %s1003_s8 = sshll.u32 %s1929_s29, 4  ;;  %s1967_s8 = int_to_ptr.vmem [resolvable:$true] %s1003_s8 }
 0x15e   : > { %v404_v22 = vld [vmem:[#allocation2] sm:$0xf] }
 0x160   : > { %773 = vrot.lane.b32.xlu1 %v1893_v15, %s1625_s15 }
 0x161   : > { %647 = vrot.lane.b32.xlu0 %v1388_v16, %s1626_s19 }
 0x165   : > { %768 = vrot.lane.b32.xlu0 %v1389_v17, %s1627_s30  ;;  %s1965_s30 = scalar_lea.hbm %s2058_s6, %s1187_s11 }
 0x1ca   : > { %v527_v21 = vpop.permute.xlu1 %526 }
 0x1cb   : > { %v410_v18 = vpop.permute.xlu0 %409 }
 0x1cc   : > { %v416_v19 = vsel %vm411_vm3, %v410_v18, 0 }
 0x1cd   : > { %1219 = vmatpush3.bf16.xpose.msra.mxu1 %v416_v19 }
 0x1ce   : > { %1230 = vmatprep.subr.bf16.mxu1 %v1619_v0  ;;  %v653_v24 = vpop.permute.xlu1 %652 }
 0x1cf   : > { %v532_v20 = vpop.permute.xlu0 %531  ;;  %v658_v25 = vsel %vm411_vm3, %v653_v24, 0 }
 0x1d0   : > { %v537_v23 = vsel %vm411_vm3, %v532_v20, 0 }
 0x1d2   : > { %v774_v26 = vpop.permute.xlu1 %773 }
 0x1d3   : > { %v648_v27 = vpop.permute.xlu0 %647  ;;  %v779_v28 = vsel %vm411_vm3, %v774_v26, 0 }
 0x1d4   : > { %1221 = vmatmul.mubr.msk.bf16.vlgmr.msra.gmra.mrb[0].mxu1 %vm411_vm3, %v404_v22 }
 0x1d5   : > { %1231 = vmatpush3.bf16.xpose.msra.mxu1 %v537_v23  ;;  %1232 = vmatprep.mubr.msk.bf16.mxu1 %vm1620_vm0, %v1619_v0 }
 0x1d6   : > { %1242 = vmatprep.subr.bf16.mxu1 %v1619_v0 }
 0x1d7   : > { %v769_v29 = vpop.permute.xlu0 %768 }
 0x1dc   : > { %1233 = vmatmul.mubr.msk.bf16.vlgmr.msra.gmra.mrb[4].mxu1 %vm411_vm3, %v527_v21 }
 0x1dd   : > { %1243 = vmatpush3.bf16.xpose.msra.mxu1 %v658_v25  ;;  %1244 = vmatprep.mubr.msk.bf16.mxu1 %vm1620_vm0, %v1619_v0 }
 0x1de   : > { %1254 = vmatprep.subr.bf16.mxu1 %v1619_v0 }
 0x1e4   : > { %1245 = vmatmul.mubr.msk.bf16.vlgmr.msra.gmra.mrb[8].mxu1 %vm411_vm3, %v648_v27 }
 0x1e5   : > { %1255 = vmatpush3.bf16.xpose.msra.mxu1 %v779_v28  ;;  %1256 = vmatprep.mubr.msk.bf16.mxu1 %vm1620_vm0, %v1619_v0 }
 0x1e6   : > { %1266 = vmatprep.subr.bf16.mxu1 %v1619_v0 }
 0x1ec   : > { %1257 = vmatmul.mubr.msk.bf16.vlgmr.msra.gmra.mrb[12].mxu1 %vm411_vm3, %v769_v29 }
 0x1ed   : > { %1270 = vmatprep.mubr.msk.bf16.mxu1 %vm1620_vm0, %v1619_v0 }
 0x2a7   : > { %v452_v30 = vpop.f32.mrb[0].mxu1 }
 0x2a8   : > { %v1222_v31 = vpop.f32.mrb[1].mxu1  ;;  %v458_v32 = vsel %vm411_vm3, %v452_v30, -inf }
 0x2a9   : > { %459 = vmax.xlane.f32.xlu1 %v458_v32  ;;  %v455_v33 = vpop.f32.mrb[2].mxu1 }
 0x2aa   : > { %v1223_v34 = vpop.f32.mrb[3].mxu1 }
 0x2af   : > { %v573_v35 = vpop.f32.mrb[4].mxu1 }
 0x2b0   : > { %v1234_v36 = vpop.f32.mrb[5].mxu1  ;;  %v579_v37 = vsel %vm411_vm3, %v573_v35, -inf }
 0x2b1   : > { %580 = vmax.xlane.f32.xlu0 %v579_v37  ;;  %v576_v38 = vpop.f32.mrb[6].mxu1 }
 0x2b2   : > { %v1235_v39 = vpop.f32.mrb[7].mxu1 }
 0x2b7   : > { %v694_v40 = vpop.f32.mrb[8].mxu1 }
 0x2b8   : > { %v1246_v41 = vpop.f32.mrb[9].mxu1  ;;  %v700_v42 = vsel %vm411_vm3, %v694_v40, -inf }
 0x2b9   : > { %701 = vmax.xlane.f32.xlu0 %v700_v42  ;;  %v697_v43 = vpop.f32.mrb[10].mxu1  ;;  %v1391_v41 = vld [vmem:[#allocation8 + $0x8] sm:$0xff]  }
 0x2ba   : > { %v1247_v44 = vpop.f32.mrb[11].mxu1 }
 0x2bf   : > { %v815_v45 = vpop.f32.mrb[12].mxu1 }
 0x2c0   : > { %v1258_v46 = vpop.f32.mrb[13].mxu1  ;;  %v821_v47 = vsel %vm411_vm3, %v815_v45, -inf }
 0x2c1   : > { %822 = vmax.xlane.f32.xlu1 %v821_v47  ;;  %v818_v48 = vpop.f32.mrb[14].mxu1 }
 0x2c2   : > { %v1259_v49 = vpop.f32.mrb[15].mxu1 }
 0x336   : > { %v460_v50 = vpop.xlane.xlu1 %459 }
 0x337   : > { %v461_v51 = vsub.f32 %v452_v30, %v460_v50 }
 0x339   : > { %v462_v52 = vmul.f32 1.442695, %v461_v51 }
 0x33b   : > { %1392 = vpow2.f32 %v462_v52 }
 0x33e   : > { %v581_v53 = vpop.xlane.xlu0 %580 }
 0x33f   : > { %v582_v54 = vsub.f32 %v573_v35, %v581_v53 }
 0x341   : > { %v583_v55 = vmul.f32 1.442695, %v582_v54 }
 0x343   : > { %1394 = vpow2.f32 %v583_v55 }
 0x345   : > { %v1393_v56 = vpop.eup %1392 }
 0x346   : > { %v702_v57 = vpop.xlane.xlu0 %701  ;;  %v464_v58 = vsel %vm411_vm3, %v1393_v56, 0.0 }
 0x347   : > { %v703_v59 = vsub.f32 %v694_v40, %v702_v57  ;;  %465 = vadd.xlane.f32.xlu0 %v464_v58  ;;  %v1390_v40 = vld [vmem:[#allocation8] sm:$0xff]  }
 0x348   : > { %1267 = vmatpush3.bf16.msra.mxu1 %v1390_v40 }
 0x349   : > { %v704_v60 = vmul.f32 1.442695, %v703_v59  ;;  %1268 = vmatprep.subr.bf16.mxu1 %v1619_v0 }
 0x34b   : > { %1396 = vpow2.f32 %v704_v60 }
 0x34c   : > { %1269 = vmatpush3.bf16.msra.mxu1 %v1391_v41 }
 0x34d   : > { %v1395_v61 = vpop.eup %1394 }
 0x34e   : > { %v585_v62 = vsel %vm411_vm3, %v1395_v61, 0.0  ;;  %v823_v2 = vpop.xlane.xlu1 %822 }
 0x34f   : > { %586 = vadd.xlane.f32.xlu1 %v585_v62  ;;  %v824_v3 = vsub.f32 %v815_v45, %v823_v2 }
 0x351   : > { %v825_v4 = vmul.f32 1.442695, %v824_v3 }
 0x353   : > { %1398 = vpow2.f32 %v825_v4 }
 0x355   : > { %v1397_v63 = vpop.eup %1396 }
 0x356   : > { %v706_v1 = vsel %vm411_vm3, %v1397_v63, 0.0 }
 0x357   : > { %707 = vadd.xlane.f32.xlu0 %v706_v1 }
 0x35d   : > { %v1399_v5 = vpop.eup %1398 }
 0x35e   : > { %v827_v6 = vsel %vm411_vm3, %v1399_v5, 0.0 }
 0x360   : > { %593 = vrot.lane.b32.xlu1 %v1889_v14, %s1628_s18  ;;  %s975_s18 = scalar_lea.sflag [#allocation11], %s1858_s17 }
 0x36d   : > { %471 = vrot.lane.b32.xlu0 %v1884_v12, %s1629_s14  ;;  %s1494_s14 = scalar_lea.vmem %s1967_s8, 512 }
 0x36e   : > { %p1495_p8 = scmp.ne.s32.totalorder %s1967_s8, %s1494_s14 }
 0x370   : > { %p1496_p1 = pnand %p1495_p8, %p2075_p2 }
 0x371   : > { %835 = vrot.lane.b32.xlu0 %v1893_v15, %s1630_s10  ;;  %s1635_s10 = smov [#allocation10]  }
 0x372   : > { %p1497_p10 = pneg %p1496_p1 }
 0x384   : > { %828 = vadd.xlane.f32.xlu1 %v827_v6 }
 0x395   : > { %714 = vrot.lane.b32.xlu1 %v1887_v13, %s1631_s20  ;;  %s1498_s20 = sshll.u32 %s1635_s10, 4  ;;  %s1499_s20 = int_to_ptr.vmem [resolvable:$false] %s1498_s20 }
 0x396   : > { %s1500_s27 = scalar_lea.vmem %s1499_s20, 1024  ;;  %p1501_p3 = scmp.lt.s32.totalorder %s1967_s8, %s1499_s20 }
 0x397   : > { %p1502_p5 = scmp.lt.s32.totalorder %s1500_s27, %s1494_s14 }
 0x399   : > { %p1503_p9 = por %p1502_p5, %p1501_p3 }
 0x39b   : > { %p1504_p11 = pnand %p1503_p9, %p1497_p10 }
 0x3d4   : > { %v466_v7 = vpop.xlane.xlu0 %465 }
 0x3d5   : > { %1400 = vrcp.f32 %v466_v7 }
 0x3dc   : > { %v587_v8 = vpop.xlane.xlu1 %586 }
 0x3dd   : > { %1402 = vrcp.f32 %v587_v8 }
 0x3df   : > { %v1401_v9 = vpop.eup %1400 }
 0x3e0   : > { %v468_v10 = vmul.f32 %v1401_v9, %v1393_v56  ;;  %v594_v16 = vpop.permute.xlu1 %593 }
 0x3e1   : > { %v599_v18 = vsel %vm476_vm4, %v594_v16, 0 }
 0x3e2   : > { %469 = vst.msk [vmem:[%s1929_s29] sm:$0xff] %vm411_vm3, %v468_v10  ;;  %v470_v17 = vpack.c.bf16 %v468_v10, %v468_v10 }
 0x3e4   : > { %v708_v11 = vpop.xlane.xlu0 %707 }
 0x3e5   : > { %1404 = vrcp.f32 %v708_v11 }
 0x3e7   : > { %v1403_v12 = vpop.eup %1402 }
 0x3e8   : > { %v589_v14 = vmul.f32 %v1403_v12, %v1395_v61  ;;  %v472_v13 = vpop.permute.xlu0 %471 }
 0x3e9   : > { %v478_v15 = vsel %vm476_vm4, %v472_v13, 0 }
 0x3ea   : > { %1164 = vst.msk [vmem:[%s1929_s29 + $0x8] sm:$0xff] %vm411_vm3, %v589_v14  ;;  %1225 = vmatpush3.bf16.msra.mxu0 %v478_v15  ;;  %v592_v21 = vpack.c.bf16 %v589_v14, %v589_v14 }
 0x3eb   : > { %1236 = vmatprep.subr.bf16.mxu0 %v1619_v0 }
 0x3ec   : > { %v836_v25 = vpop.permute.xlu0 %835 }
 0x3ed   : > { %1227 = vmatmul.mubr.msk.bf16.vlgmr.msra.gmra.mrb[4].mxu0 %vm411_vm3, %v470_v17  ;;  %v841_v27 = vsel %vm476_vm4, %v836_v25, 0 }
 0x3ee   : > { %1237 = vmatpush3.bf16.msra.mxu0 %v599_v18  ;;  %1238 = vmatprep.mubr.msk.bf16.mxu0 %vm1620_vm0, %v1619_v0 }
 0x3ef   : > { %v1405_v19 = vpop.eup %1404  ;;  %1248 = vmatprep.subr.bf16.mxu0 %v1619_v0 }
 0x3f0   : > { %v710_v20 = vmul.f32 %v1405_v19, %v1397_v63 }
 0x3f2   : > { %1169 = vst.msk [vmem:[%s1929_s29 + $0x10] sm:$0xff] %vm411_vm3, %v710_v20  ;;  %v713_v26 = vpack.c.bf16 %v710_v20, %v710_v20 }
 0x3f5   : > { %1239 = vmatmul.mubr.msk.bf16.vlgmr.msra.gmra.mrb[8].mxu0 %vm411_vm3, %v592_v21 }
 0x3f6   : > { %1250 = vmatprep.mubr.msk.bf16.mxu0 %vm1620_vm0, %v1619_v0 }
 0x411   : > { %v829_v22 = vpop.xlane.xlu1 %828 }
 0x412   : > { %1406 = vrcp.f32 %v829_v22 }
 0x415   : > { %v715_v23 = vpop.permute.xlu1 %714 }
 0x416   : > { %v720_v24 = vsel %vm476_vm4, %v715_v23, 0 }
 0x417   : > { %1249 = vmatpush3.bf16.msra.mxu0 %v720_v24 }
 0x418   : > { %1260 = vmatprep.subr.bf16.mxu0 %v1619_v0 }
 0x41a   : > { %1251 = vmatmul.mubr.msk.bf16.vlgmr.msra.gmra.mrb[12].mxu0 %vm411_vm3, %v713_v26 }
 0x41b   : > { %1261 = vmatpush3.bf16.msra.mxu0 %v841_v27  ;;  %1262 = vmatprep.mubr.msk.bf16.mxu0 %vm1620_vm0, %v1619_v0 }
 0x41c   : > { %v1407_v28 = vpop.eup %1406 }
 0x41d   : > { %v831_v29 = vmul.f32 %v1407_v28, %v1399_v5 }
 0x41f   : > { %1174 = vst.msk [vmem:[%s1929_s29 + $0x18] sm:$0xff] %vm411_vm3, %v831_v29  ;;  %v834_v30 = vpack.c.bf16 %v831_v29, %v831_v29 }
 0x422   : > { %1263 = vmatmul.mubr.msk.bf16.vlgmr.msra.gmra.mrb[16].mxu0 %vm411_vm3, %v834_v30 }
 0x4c0   : > { %v514_v31 = vpop.f32.mrb[4].mxu0 }
 0x4c1   : > { %v1228_v32 = vpop.f32.mrb[5].mxu0  ;;  %v520_v0 = vpack.c.bf16 %v514_v31, %v514_v31 }
 0x4c2   : > { %v517_v33 = vpop.f32.mrb[6].mxu0 }
 0x4c3   : > { %v1229_v34 = vpop.f32.mrb[7].mxu0 }
 0x4c8   : > { %v635_v35 = vpop.f32.mrb[8].mxu0 }
 0x4c9   : > { %v641_v36 = vpack.c.bf16 %v635_v35, %v635_v35  ;;  %v1240_v37 = vpop.f32.mrb[9].mxu0 }
 0x4ca   : > { %v638_v38 = vpop.f32.mrb[10].mxu0 }
 0x4cb   : > { %885 = vrot.lane.b32.xlu1 %v641_v36, %s1632_s7  ;;  %v1241_v39 = vpop.f32.mrb[11].mxu0 }
 0x4ed   : > { %v756_v42 = vpop.f32.mrb[12].mxu0 }
 0x4ee   : > { %v762_v43 = vpack.c.bf16 %v756_v42, %v756_v42  ;;  %v1252_v44 = vpop.f32.mrb[13].mxu0 }
 0x4ef   : > { %v759_v45 = vpop.f32.mrb[14].mxu0 }
 0x4f0   : > { %888 = vrot.lane.b32.xlu0 %v762_v43, %s1633_s9  ;;  %v1253_v46 = vpop.f32.mrb[15].mxu0 }
 0x4f5   : > { %v877_v47 = vpop.f32.mrb[16].mxu0 }
 0x4f6   : > { %v883_v48 = vpack.c.bf16 %v877_v47, %v877_v47  ;;  %v1264_v49 = vpop.f32.mrb[17].mxu0 }
 0x4f7   : > { %v880_v50 = vpop.f32.mrb[18].mxu0 }
 0x4f8   : > { %891 = vrot.lane.b32.xlu1 %v883_v48, %s1634_s28  ;;  %v1265_v51 = vpop.f32.mrb[19].mxu0 }
 0x53d   : > { %v886_v52 = vpop.permute.xlu1 %885 }
 0x53e   : > { %v895_v54 = vsel %vm411_vm3, %v520_v0, %v886_v52 }
 0x562   : > { %v889_v53 = vpop.permute.xlu0 %888 }
 0x563   : > { %v898_v55 = vsel %vm896_vm5, %v895_v54, %v889_v53 }
 0x56a   : > { %v892_v56 = vpop.permute.xlu1 %891 }
 0x56b   : > { %v901_v57 = vsel %vm899_vm6, %v898_v55, %v892_v56 }
 0x56c   : > { %1271 = vmatmul.mubr.msk.bf16.vlgmr.msra.gmra.mrb[16].mxu1 %vm352_vm1, %v901_v57 }
 0x56d   : > { %1507 = shalt.err (!%p1504_p11)
}
 0x56e   : > { %s1508_s29 = scalar_lea.hbm %s1965_s30, 512  ;;  %s1512_s11 = scalar_lea.hbm %s2058_s6, 1024 }
 0x56f   : > { %p1509_p0 = scmp.ne.s32.totalorder %s1965_s30, %s1508_s29  ;;  %p1513_p6 = scmp.lt.u32.totalorder %s1965_s30, %s2058_s6 }
 0x570   : > { %p1514_p7 = scmp.lt.u32.totalorder %s1512_s11, %s1508_s29  ;;  %p1516_p8 = scmp.lt.u32.totalorder %s1508_s29, %s1965_s30 }
 0x571   : > { %p1510_p4 = pnand %p1509_p0, %p2075_p2 }
 0x572   : > { %p1515_p12 = por %p1514_p7, %p1513_p6 }
 0x573   : > { %p1511_p13 = pneg %p1510_p4 }
 0x574   : > { %p1517_p1 = por %p1516_p8, %p1515_p12 }
 0x576   : > { %p1518_p10 = pnand %p1517_p1, %p1511_p13 }
 0x578   : > { %1521 = shalt.err (!%p1518_p10)
}
 0x579   : > { %s1636_s14 = smov 128   ;;  %s1152_s10 = sshll.u32 %s1858_s17, 3  ;;  %v1176_v58 = vld [vmem:[%s2056_s4] ss:$0 sm:$0xff] }
 0x57a   : > { %1285 = dma.vmem_to_hbm [thread:$0]  (%p2075_p2), %s1967_s8, 512, %s1965_s30, %s975_s18, %s1636_s14, %s1636_s14, %s1632_s7  }
 0x57b   : > { %s1182_s29 = sshll.u32 %s1604_s24, 7  ;;  %s315_s9 = scalar_lea.vmem [#allocation9], %s1152_s10 }
 0x57c   : > { %s989_s28 = sshll.u32 %s315_s9, 4  ;;  %s2002_s19 = scalar_lea.hbm %s2057_s5, %s1182_s29  ;;  %s2004_s28 = int_to_ptr.vmem [resolvable:$true] %s989_s28 }
 0x57d   : > { %s970_s24 = scalar_lea.sflag [#allocation5], %s1858_s17  ;;  %s1522_s7 = scalar_lea.vmem %s2004_s28, 128 }
 0x57e   : > { %p1523_p3 = scmp.ne.s32.totalorder %s2004_s28, %s1522_s7  ;;  %s1637_s8 = smov [#allocation9]  }
 0x57f   : > { %s1526_s30 = sshll.u32 %s1637_s8, 4  ;;  %s1527_s30 = int_to_ptr.vmem [resolvable:$false] %s1526_s30 }
 0x580   : > { %p1524_p5 = pnand %p1523_p3, %p2075_p2  ;;  %s1528_s18 = scalar_lea.vmem %s1527_s30, 256 }
 0x581   : > { %p1529_p11 = scmp.lt.s32.totalorder %s2004_s28, %s1527_s30  ;;  %p1530_p0 = scmp.lt.s32.totalorder %s1528_s18, %s1522_s7 }
 0x582   : > { %p1525_p9 = pneg %p1524_p5 }
 0x583   : > { %p1531_p4 = por %p1530_p0, %p1529_p11 }
 0x585   : > { %p1532_p13 = pnand %p1531_p4, %p1525_p9 }
 0x63f   : > { %v962_v59 = vpop.f32.mrb[16].mxu1 }
 0x640   : > { %v963_v60 = vadd.f32 %v1176_v58, %v962_v59  ;;  %v1272_v61 = vpop.f32.mrb[17].mxu1 }
 0x641   : > { %v965_v62 = vpop.f32.mrb[18].mxu1 }
 0x642   : > { %v1273_v63 = vpop.f32.mrb[19].mxu1  ;;  %968 = vst.msk [vmem:[%s315_s9] sm:$0xff] %vm352_vm1, %v963_v60 }
 0x643   : > { %1535 = shalt.err (!%p1532_p13)
}
 0x644   : > { %s1536_s17 = scalar_lea.hbm %s2002_s19, 128  ;;  %s1540_s20 = scalar_lea.hbm %s2057_s5, 256 }
 0x645   : > { %p1537_p6 = scmp.ne.s32.totalorder %s2002_s19, %s1536_s17  ;;  %p1541_p8 = scmp.lt.u32.totalorder %s2002_s19, %s2057_s5 }
 0x646   : > { %p1542_p1 = scmp.lt.u32.totalorder %s1540_s20, %s1536_s17  ;;  %p1544_p3 = scmp.lt.u32.totalorder %s1536_s17, %s2002_s19 }
 0x647   : > { %p1538_p7 = pnand %p1537_p6, %p2075_p2 }
 0x648   : > { %p1543_p10 = por %p1542_p1, %p1541_p8 }
 0x649   : > { %p1539_p12 = pneg %p1538_p7 }
 0x64a   : > { %p1545_p5 = por %p1544_p3, %p1543_p10 }
 0x64c   : > { %p1546_p9 = pnand %p1545_p5, %p1539_p12 }
 0x64e   : > { %1549 = shalt.err (!%p1546_p9)
}
 0x64f   : > { %1284 = dma.vmem_to_hbm [thread:$0]  (%p2075_p2), %s2004_s28, 128, %s2002_s19, %s970_s24  }
 0x650 PF: > { %s2076_s9 = sld [smem:[#allocation16_spill]]  ;;  %s1018_s11 = sand.u32 1, %s1592_s21  }
 0x651   : > { %p2078_p0 = scmp.ge.s32.totalorder %s1612_s26, 2  ;;  %s1019_s15 = scalar_lea.sflag [#allocation5], %s1018_s11 }
 0x656   : > { %p2077_p11 = scmp.ne.s32.totalorder %s2076_s9, 0 }
 0x658   : > { %p1300_p4 = pnand %p2078_p0, %p2077_p11 }
 0x65a   : > { %1583 = dma.done.wait (!%p1300_p4), %s1019_s15, 128  }
 0x65b   : > { %1585 = vsyncadd (!%p1300_p4), %s1019_s15, 4294967168  ;;  %s1028_s7 = scalar_lea.sflag [#allocation11], %s1018_s11 }
 0x65c   : > { %1587 = dma.done.wait (!%p1300_p4), %s1028_s7, 512  }
 0x65d   : > { %1589 = vsyncadd (!%p1300_p4), %s1028_s7, 4294966784  ;;  %s27_s26 = sadd.s32 1, %s1612_s26   ;;  %s2079_s21 = smov %s1596_s22 }
 0x65e   : > { %p24_p13 = scmp.ge.s32.totalorder %s27_s26, 4   ;;  %s2080_s22 = smov %s1600_s23 }
 0x65f   : > { %s2081_s23 = smov %s1815_s13  ;;  %s2082_s24 = smov %s1608_s25 }
 0x660   : > { %s2083_s25 = smov %s2085_s16  ;;  %26 = sbr.rel (!%p24_p13) target bundleno = 9 (0x9), region = 118 }
 0x667   :  { %1033 = vsyncpa [#allocation4], 1 }
 0x668   :  { %1035 = vsyncpa [#allocation4 + $0x1], 1 }
 0x669   :  { %1036 = vsyncpa [#allocation7], 1 }
 0x66a   :  { %1037 = vsyncpa [#allocation5], 1 }
 0x66b   :  { %1039 = vsyncpa [#allocation5 + $0x1], 1 }
 0x66c   :  { %1040 = vsyncpa [#allocation11], 1 }
 0x66d   :  { %1042 = vsyncpa [#allocation11 + $0x1], 1 }

</bundles_post_ra>
